<compile_context>
chip_gen: v5e
topology: v5e:2x2
jax: 0.10.0
libtpu: 0.0.40
codegen_flags: <defaults>
</compile_context>

<pallas_src>
import math
from functools import partial

import jax
import jax.numpy as jnp
from jax.experimental import pallas as pl
from jax.experimental.pallas import tpu as pltpu


def _se_kernel(x_ref, w1t_ref, b1_ref, w2_ref, b2_ref, o_ref):
    """One batch block. x_ref: (Bb, Ce, HW); weights are the (block-diag) SE MLP."""
    x = x_ref[...]                                                    # (Bb, Ce, HW)

    # Global average pool over the flattened spatial (lane) axis.  The f32
    # accumulation is requested via the reduction dtype, so no full f32 copy of
    # the (Bb, Ce, HW) slab is materialized (matters for bf16 at large blocks).
    pooled = jnp.mean(x, axis=-1, dtype=jnp.float32, keepdims=True)   # (Bb, Ce, 1)

    w1t = w1t_ref[...][None]                                          # (1, Ce, Oe)
    b1 = b1_ref[...][None]                                            # (1, 1,  Oe)
    w2 = w2_ref[...][None]                                            # (1, Ce, Oe)
    b2 = b2_ref[...][None]                                            # (1, Ce, 1)

    # SE MLP on the VPU/XLU (broadcast-multiply + tiny keepdims reductions);
    # every op keeps explicit unit dims so no relayout/reshape is needed.
    # TODO(synk): for realistic SE blocks (C in the hundreds, out_ch=C/r) switch
    # these two layers to jnp.dot(..., preferred_element_type=jnp.float32) so
    # the channel mixing runs on the MXU instead of competing for VALU slots.
    h = jnp.sum(pooled * w1t, axis=1, keepdims=True) + b1             # (Bb, 1, Oe)
    h = jnp.maximum(h, 0.0)

    a = jnp.sum(h * w2, axis=-1, keepdims=True) + b2                  # (Bb, Ce, 1)
    a = jax.nn.sigmoid(a)

    # Gate: broadcast the per-(image, channel) attention over the spatial axis.
    # Done in the input dtype so a second full-precision slab is never live.
    o_ref[...] = x * a.astype(x.dtype)


def _vmem_capacity_bytes():
    """Per-TensorCore VMEM capacity; conservative (v7x) fallback if unavailable."""
    try:
        info = pltpu.get_tpu_info()
        for name in ("vmem_capacity_bytes", "vmem_size_bytes", "vmem_bytes"):
            v = getattr(info, name, None)
            if v:
                return int(v)
    except Exception:
        pass
    return 64 << 20  # conservative: v7x has 64 MiB per TensorCore


def se_block(x, w1, b1, w2, b2, *, target_block_bytes=None, alias_input=False):
    """SEBlock forward.

    x : (N, C, H, W);  w1 : (out_ch, C);  b1 : (out_ch,);
    w2 : (C, out_ch);  b2 : (C,).   Returns (N, C, H, W) in x.dtype.

    alias_input=True aliases the output onto x's buffer (input_output_aliases);
    only use it when x is donated / dead after the call, otherwise XLA inserts a
    defensive copy of x (an extra HBM pass).
    """
    N, C, H, W = x.shape
    out_ch = w1.shape[0]
    HW = H * W

    # ---- Fold g images into the channel (sublane) axis when C < 8. ----------
    # The fold is capped so at least 2 effective batch rows remain (when N >= 2)
    # so the grid can still be split across TensorCores / pipelined.
    g = 1
    if C < 8:
        g = min(8 // math.gcd(C, 8), max(1, N // 2))  # densify sublanes, keep n_eff >= 2
        while g > 1 and N % g != 0:                   # fold must evenly divide the batch
            g -= 1
    n_eff = N // g
    c_eff = g * C
    o_eff = g * out_ch

    x_eff = x.reshape(n_eff, c_eff, HW)  # contiguous -> pure metadata reshape
    # TODO(synk): for workloads with H*W < 128, also pack the spatial axis in the
    # wrapper (adjusting the mean divisor) so stores stay lane-dense.

    # Block-diagonal expansion of the 1x1-conv weights keeps channel mixing
    # strictly within each original image after the fold.
    eye = jnp.eye(g, dtype=w1.dtype)
    w1t_eff = jnp.kron(eye, w1).T                      # (c_eff, o_eff)
    w2_eff = jnp.kron(jnp.eye(g, dtype=w2.dtype), w2)  # (c_eff, o_eff)
    b1_eff = jnp.tile(b1, g).reshape(1, o_eff)
    b2_eff = jnp.tile(b2, g).reshape(c_eff, 1)

    # ---- Generation-aware block sizing. --------------------------------------
    vmem_cap = _vmem_capacity_bytes()
    if target_block_bytes is None:
        # Double-buffered in + out = 4 block copies; leave ~16 MiB headroom.
        # -> ~16 MiB blocks on 128 MiB VMEM (v5e/v6e), ~12 MiB on 64 MiB (v7x).
        target_block_bytes = max(2 << 20, min(16 << 20, (vmem_cap - (16 << 20)) // 4))

    item_bytes = c_eff * HW * x.dtype.itemsize
    bb_by_size = max(1, target_block_bytes // item_bytes)
    bb_by_cores = max(1, n_eff // 2)   # guarantee >=2 grid steps whenever n_eff >= 2
    bb = max(1, min(n_eff, bb_by_size, bb_by_cores))

    # cdiv grid with a ragged (masked) last block: awkward batch sizes never
    # force tiny blocks; out-of-bounds rows are garbage on read and their
    # writes are dropped (each row's compute is independent, so this is safe).
    num_blocks = pl.cdiv(n_eff, bb)

    block_bytes = bb * item_bytes
    weight_bytes = (2 * c_eff * o_eff + o_eff + c_eff) * jnp.dtype(w1.dtype).itemsize
    need = 4 * block_bytes + 4 * weight_bytes + (4 << 20)
    vmem_limit = int(max(32 << 20, min(need, int(0.9 * vmem_cap))))
    # TODO(synk): for slabs whose double-buffered footprint exceeds the chip's
    # VMEM (single image > ~target), fall back to a split pool+MLP (XLA) + a
    # gate-only Pallas kernel tiled over (C, HW) instead of shrinking blocks.

    out_eff = pl.pallas_call(
        _se_kernel,
        out_shape=jax.ShapeDtypeStruct((n_eff, c_eff, HW), x.dtype),
        grid_spec=pltpu.PrefetchScalarGridSpec(
            num_scalar_prefetch=0,
            grid=(num_blocks,),
            in_specs=[
                # x / out keep the default double-buffering (Buffered(2)):
                # the kernel is HBM-bound, deeper buffering only costs VMEM.
                pl.BlockSpec((bb, c_eff, HW), lambda i: (i, 0, 0)),
                pl.BlockSpec((c_eff, o_eff), lambda i: (0, 0)),
                pl.BlockSpec((1, o_eff), lambda i: (0, 0)),
                pl.BlockSpec((c_eff, o_eff), lambda i: (0, 0)),
                pl.BlockSpec((c_eff, 1), lambda i: (0, 0)),
            ],
            out_specs=pl.BlockSpec((bb, c_eff, HW), lambda i: (i, 0, 0)),
        ),
        compiler_params=pltpu.CompilerParams(
            dimension_semantics=("parallel",),
            vmem_limit_bytes=vmem_limit,
        ),
        input_output_aliases=({0: 0} if alias_input else {}),
    )(x_eff, w1t_eff, b1_eff, w2_eff, b2_eff)

    return out_eff.reshape(N, C, H, W)


def se_block_ref(x, w1, b1, w2, b2):
    """Pure-JAX reference mirroring the PyTorch module."""
    pooled = jnp.mean(x, axis=(2, 3))                  # (N, C)
    h = jax.nn.relu(pooled @ w1.T + b1)                # (N, out_ch)
    a = jax.nn.sigmoid(h @ w2.T + b2)                  # (N, C)
    return x * a[:, :, None, None]


def _run_case(fn, key, N, C, H, W, out_ch):
    ks = jax.random.split(key, 5)
    x = jax.random.normal(ks[0], (N, C, H, W), dtype=jnp.float32)
    w1 = jax.random.normal(ks[1], (out_ch, C), dtype=jnp.float32) * 0.1
    b1 = jax.random.normal(ks[2], (out_ch,), dtype=jnp.float32) * 0.1
    w2 = jax.random.normal(ks[3], (C, out_ch), dtype=jnp.float32) * 0.1
    b2 = jax.random.normal(ks[4], (C,), dtype=jnp.float32) * 0.1

    out = fn(x, w1, b1, w2, b2)
    jax.block_until_ready(out)

    ref = se_block_ref(x, w1, b1, w2, b2)
    assert out.shape == (N, C, H, W)
    err = jnp.max(jnp.abs(out - ref))
    assert jnp.allclose(out, ref, atol=1e-5, rtol=1e-5), f"max abs err {err}"


if __name__ == "__main__":
    key = jax.random.PRNGKey(0)
    k1, k2, k3, k4 = jax.random.split(key, 4)
    se = jax.jit(se_block)

    # Primary case matching the module's intent (batch=2, channels=4, 16x16
    # spatial).  Fold is capped so n_eff=2 -> grid=(2,), both TCs active.
    _run_case(se, k1, N=2, C=4, H=16, W=16, out_ch=8)

    # Non-aligned shapes: C not a multiple of 8, H*W not a multiple of 128
    # (checks that padded sublanes/lanes never leak into the pooled mean).
    _run_case(se, k2, N=2, C=3, H=15, W=15, out_ch=5)

    # Multi-step grid: small per-step target forces several batch blocks,
    # exercising the block index maps and the "parallel" grid axis.
    se_multi = jax.jit(partial(se_block, target_block_bytes=16 * 1024))
    _run_case(se_multi, k3, N=16, C=4, H=16, W=16, out_ch=8)

    # Ragged cdiv grid: n_eff=7 with bb=3 -> 3 blocks, last one partially valid
    # (verifies masked writes / garbage-read safety of the tail block).
    se_ragged = jax.jit(partial(se_block, target_block_bytes=32 * 1024))
    _run_case(se_ragged, k4, N=14, C=4, H=16, W=16, out_ch=8)

    print("KERNEL_OK")
</pallas_src>

<mosaic_0001>
module attributes {stable_mosaic.version = 11 : i64} {
  func.func @_se_kernel(%arg0: i32, %arg1: memref<1x4x256xf32, #tpu.memory_space<vmem>>, %arg2: memref<4x8xf32, #tpu.memory_space<vmem>>, %arg3: memref<1x8xf32, #tpu.memory_space<vmem>>, %arg4: memref<4x8xf32, #tpu.memory_space<vmem>>, %arg5: memref<4x1xf32, #tpu.memory_space<vmem>>, %arg6: memref<1x4x256xf32, #tpu.memory_space<vmem>>) attributes {dimension_semantics = [#tpu.dimension_semantics<parallel>], iteration_bounds = array<i64: 2>, scalar_prefetch = 0 : i64, scratch_operands = 0 : i64, tpu.core_type = #tpu.core_type<tc>, window_params = [{transform_indices = @transform_0, window_bounds = array<i64: 1, 4, 256>}, {pipeline_mode = #tpu.pipeline_mode<synchronous>, transform_indices = @transform_1, window_bounds = array<i64: 4, 8>}, {pipeline_mode = #tpu.pipeline_mode<synchronous>, transform_indices = @transform_2, window_bounds = array<i64: 1, 8>}, {pipeline_mode = #tpu.pipeline_mode<synchronous>, transform_indices = @transform_3, window_bounds = array<i64: 4, 8>}, {pipeline_mode = #tpu.pipeline_mode<synchronous>, transform_indices = @transform_4, window_bounds = array<i64: 4, 1>}, {transform_indices = @transform_5, window_bounds = array<i64: 1, 4, 256>}]} {
    %c0 = arith.constant 0 : index
    %c0_0 = arith.constant 0 : index
    %c0_1 = arith.constant 0 : index
    %0 = vector.load %arg1[%c0, %c0_0, %c0_1] : memref<1x4x256xf32, #tpu.memory_space<vmem>>, vector<1x4x256xf32>
    %cst = arith.constant dense<0.000000e+00> : vector<1x4xf32>
    %1 = vector.multi_reduction <add>, %0, %cst [2] : vector<1x4x256xf32> to vector<1x4xf32>
    %2 = vector.shape_cast %1 : vector<1x4xf32> to vector<1x4x1xf32>
    %cst_2 = arith.constant 2.560000e+02 : f32
    %3 = vector.broadcast %cst_2 : f32 to vector<1x4x1xf32>
    %4 = arith.divf %2, %3 : vector<1x4x1xf32>
    %c0_3 = arith.constant 0 : index
    %c0_4 = arith.constant 0 : index
    %5 = vector.load %arg2[%c0_3, %c0_4] : memref<4x8xf32, #tpu.memory_space<vmem>>, vector<4x8xf32>
    %6 = vector.shape_cast %5 : vector<4x8xf32> to vector<1x4x8xf32>
    %c0_5 = arith.constant 0 : index
    %c0_6 = arith.constant 0 : index
    %7 = vector.load %arg3[%c0_5, %c0_6] : memref<1x8xf32, #tpu.memory_space<vmem>>, vector<1x8xf32>
    %8 = vector.shape_cast %7 : vector<1x8xf32> to vector<1x1x8xf32>
    %c0_7 = arith.constant 0 : index
    %c0_8 = arith.constant 0 : index
    %9 = vector.load %arg4[%c0_7, %c0_8] : memref<4x8xf32, #tpu.memory_space<vmem>>, vector<4x8xf32>
    %10 = vector.shape_cast %9 : vector<4x8xf32> to vector<1x4x8xf32>
    %c0_9 = arith.constant 0 : index
    %c0_10 = arith.constant 0 : index
    %11 = vector.load %arg5[%c0_9, %c0_10] : memref<4x1xf32, #tpu.memory_space<vmem>>, vector<4x1xf32>
    %12 = vector.shape_cast %11 : vector<4x1xf32> to vector<1x4x1xf32>
    %13 = vector.broadcast %4 : vector<1x4x1xf32> to vector<1x4x8xf32>
    %14 = arith.mulf %13, %6 : vector<1x4x8xf32>
    %cst_11 = arith.constant dense<0.000000e+00> : vector<1x8xf32>
    %15 = vector.multi_reduction <add>, %14, %cst_11 [1] : vector<1x4x8xf32> to vector<1x8xf32>
    %16 = vector.shape_cast %15 : vector<1x8xf32> to vector<1x1x8xf32>
    %17 = arith.addf %16, %8 : vector<1x1x8xf32>
    %cst_12 = arith.constant 0.000000e+00 : f32
    %18 = vector.broadcast %cst_12 : f32 to vector<1x1x8xf32>
    %19 = arith.maximumf %17, %18 : vector<1x1x8xf32>
    %20 = vector.broadcast %19 : vector<1x1x8xf32> to vector<1x4x8xf32>
    %21 = arith.mulf %20, %10 : vector<1x4x8xf32>
    %cst_13 = arith.constant dense<0.000000e+00> : vector<1x4xf32>
    %22 = vector.multi_reduction <add>, %21, %cst_13 [2] : vector<1x4x8xf32> to vector<1x4xf32>
    %23 = vector.shape_cast %22 : vector<1x4xf32> to vector<1x4x1xf32>
    %24 = arith.addf %23, %12 : vector<1x4x1xf32>
    %25 = arith.negf %24 : vector<1x4x1xf32>
    %26 = math.exp %25 : vector<1x4x1xf32>
    %cst_14 = arith.constant 1.000000e+00 : f32
    %27 = vector.broadcast %cst_14 : f32 to vector<1x4x1xf32>
    %28 = arith.addf %27, %26 : vector<1x4x1xf32>
    %29 = arith.divf %27, %28 : vector<1x4x1xf32>
    %30 = vector.broadcast %29 : vector<1x4x1xf32> to vector<1x4x256xf32>
    %31 = arith.mulf %0, %30 : vector<1x4x256xf32>
    %c0_15 = arith.constant 0 : index
    %c0_16 = arith.constant 0 : index
    %c0_17 = arith.constant 0 : index
    %32 = vector.load %arg6[%c0_15, %c0_16, %c0_17] : memref<1x4x256xf32, #tpu.memory_space<vmem>>, vector<1x4x256xf32>
    tpu.vector_store %arg6[%c0_15, %c0_16, %c0_17], %31 {strides = array<i32>} : memref<1x4x256xf32, #tpu.memory_space<vmem>>, vector<1x4x256xf32>,
    return
  }
  func.func @transform_0(%arg0: i32) -> (i32, i32, i32) {
    %c0_i32 = arith.constant 0 : i32
    %c0_i32_0 = arith.constant 0 : i32
    %c0_i32_1 = arith.constant 0 : i32
    return %arg0, %c0_i32, %c0_i32_0 : i32, i32, i32
  }
  func.func @transform_1(%arg0: i32) -> (i32, i32) {
    %c0_i32 = arith.constant 0 : i32
    %c0_i32_0 = arith.constant 0 : i32
    %c0_i32_1 = arith.constant 0 : i32
    return %c0_i32, %c0_i32_0 : i32, i32
  }
  func.func @transform_2(%arg0: i32) -> (i32, i32) {
    %c0_i32 = arith.constant 0 : i32
    %c0_i32_0 = arith.constant 0 : i32
    %c0_i32_1 = arith.constant 0 : i32
    return %c0_i32, %c0_i32_0 : i32, i32
  }
  func.func @transform_3(%arg0: i32) -> (i32, i32) {
    %c0_i32 = arith.constant 0 : i32
    %c0_i32_0 = arith.constant 0 : i32
    %c0_i32_1 = arith.constant 0 : i32
    return %c0_i32, %c0_i32_0 : i32, i32
  }
  func.func @transform_4(%arg0: i32) -> (i32, i32) {
    %c0_i32 = arith.constant 0 : i32
    %c0_i32_0 = arith.constant 0 : i32
    %c0_i32_1 = arith.constant 0 : i32
    return %c0_i32, %c0_i32_0 : i32, i32
  }
  func.func @transform_5(%arg0: i32) -> (i32, i32, i32) {
    %c0_i32 = arith.constant 0 : i32
    %c0_i32_0 = arith.constant 0 : i32
    %c0_i32_1 = arith.constant 0 : i32
    return %arg0, %c0_i32, %c0_i32_0 : i32, i32, i32
  }
}

</mosaic_0001>

<bundles_post_ra>
// kernel: se_block.1
= control target key start
LH: loop header
LB: loop body
LE: loop exit
PB: predicated region body
PF: predicated region fallthrough
CT: control target
= control target key end

     0   :  { %s426_s18 = smov 0   ;;  %s466_s0 = inlined_call_operand.vmem [shape: f32[2,4,256], index: 0, kind: input, shape index: {}]   ;;  %s467_s1 = inlined_call_operand.vmem [shape: f32[4,8], index: 1, kind: input, shape index: {}]   ;;  %s468_s2 = inlined_call_operand.vmem [shape: f32[1,8], index: 2, kind: input, shape index: {}]   ;;  %s469_s3 = inlined_call_operand.vmem [shape: f32[4,8], index: 3, kind: input, shape index: {}]   ;;  %s470_s4 = inlined_call_operand.vmem [shape: f32[4,1], index: 4, kind: input, shape index: {}]   ;;  %s471_s5 = inlined_call_operand.vmem [shape: f32[2,4,256], index: 5, kind: output, shape index: {}]  }
   0x1 LB: > { %s352_s19 = sadd.s32 4294967295, %s391_s18   ;;  %p356_p0 = scmp.ge.s32.totalorder %s391_s18, 1  ;;  %s391_s18 = sphi %s426_s18, %s15_s18  }
   0x2   : > { %p187_p1 = scmp.lt.s32.totalorder %s391_s18, 3 }
   0x4   : > { %p188_p2 = pnand %p356_p0, %p187_p1 }
   0x5   : > { %p215_p3 = scmp.lt.s32.totalorder (!%p188_p2), %s352_s19, 1 }
   0x6   : > { %191 = sbr.rel (%p188_p2) target bundleno = 434 (0x1b2), region = 40 }
   0xb   : > { %s473_s19 = smov (!%p215_p3, %s352_s19), 1  ;;  %vm232_vm0 = vcmask 1043456   ;;  %v393_v6 = vmov 256.0   ;;  %v246_v13 = vld [vmem:[%s467_s1] sm:$0xf]  ;;  %vm251_vm2 = vcmask 60416  }
   0xc   : > { %s364_s20 = sshll.u32 %s473_s19, 3  ;;  %379 = vrcp.f32 %v393_v6  ;;  %v247_v23 = vld [vmem:[%s468_s2] sm:$0x1]  ;;  %v394_v31 = vmov 0   ;;  %v395_v48 = vmov 839922192  }
   0xd   : > { %s219_s23 = scalar_lea.vmem %s466_s0, %s364_s20  ;;  %v248_v27 = vld [vmem:[%s469_s3] sm:$0xf]  ;;  %377 = vset.pattern.permute.xlu1 %v394_v31  ;;  %378 = vset.pattern.permute.xlu0 %v394_v31  ;;  %v291_v49 = vunpack.c.l.s4 %v395_v48  ;;  %s224_s9 = scalar_lea.vmem %s471_s5, %s364_s20 }
   0xe   : > { %v442_v0 = vld [vmem:[%s219_s23] sm:$0xff] }
   0xf   : > { %227 = vst [vmem:[#allocation1] ss:$2 sm:$0xff] %v442_v0  ;;  %v249_v32 = vld [vmem:[%s470_s4] sm:$0xf]  ;;  %v292_v50 = vunpack.c.0.s8 %v291_v49 }
  0x12   : > { %v380_v7 = vpop.eup %379 }
  0x13   : > { %v239_v8 = vmul.f32 256.0, %v380_v7  ;;  %vm243_vm1 = vweird.f32 %v380_v7 }
  0x15   : > { %v240_v9 = vsub.f32 1.0, %v239_v8 }
  0x16   : > { %v228_v1 = vld.sshfl [vmem:[#allocation1] sm:$0xff pattern:$0x75316420]  ;;  %v229_v2 = vld.sshfl [vmem:[#allocation1 + $0x8] sm:$0xff pattern:$0x75316420] }
  0x17   : > { %v233_v3 = vsel %vm232_vm0, %v228_v1, 0.0  ;;  %v234_v4 = vsel %vm232_vm0, %v229_v2, 0.0  ;;  %v241_v10 = vmul.f32 %v380_v7, %v240_v9 }
  0x18   : > { %v235_v5 = vadd.f32 %v234_v4, %v233_v3 }
  0x19   : > { %v242_v11 = vadd.f32 %v380_v7, %v241_v10 }
  0x1a   : > { %236 = vadd.xlane.f32.xlu0 %v235_v5 }
  0x1b   : > { %v244_v12 = vsel %vm243_vm1, %v380_v7, %v242_v11 }
  0x8d   : > { %v237_v14 = vpop.xlane.xlu0 %236 }
  0x8e   : > { %v245_v15 = vmul.f32 %v244_v12, %v237_v14 }
  0x90   : > { %v250_v16 = vmul.f32 %v246_v13, %v245_v15 }
  0x92   : > { %v252_v17 = vsel %vm251_vm2, %v250_v16, 0.0 }
  0x93   : > { %v253_v18 = vrot.slane %v252_v17, 4 }
  0x95   : > { %v254_v19 = vadd.f32 %v253_v18, %v252_v17 }
  0x97   : > { %v255_v20 = vrot.slane %v254_v19, 2 }
  0x99   : > { %v256_v21 = vadd.f32 %v255_v20, %v254_v19 }
  0x9b   : > { %v257_v22 = vrot.slane %v256_v21, 1 }
  0x9d   : > { %v258_v24 = vadd.f32 %v257_v22, %v256_v21 }
  0x9f   : > { %v259_v25 = vadd.f32 %v258_v24, %v247_v23 }
  0xa1   : > { %v260_v26 = vmax.f32 %v259_v25, 0.0 }
  0xa3   : > { %v261_v28 = vperm.slane %v260_v26, 0 }
  0xa5   : > { %v262_v29 = vmul.f32 %v261_v28, %v248_v27 }
  0xa7   : > { %v263_v30 = vsel %vm251_vm2, %v262_v29, 0.0 }
  0xa8   : > { %264 = vadd.xlane.f32.xlu0 %v263_v30 }
 0x11b   : > { %v265_v33 = vpop.xlane.xlu0 %264 }
 0x11c   : > { %v266_v34 = vadd.f32 %v265_v33, %v249_v32 }
 0x11e   : > { %v361_v35 = vmul.f32 -1.442695, %v266_v34 }
 0x120   : > { %381 = vpow2.f32 %v361_v35 }
 0x126   : > { %v382_v36 = vpop.eup %381 }
 0x127   : > { %v270_v37 = vadd.f32 1.0, %v382_v36 }
 0x129   : > { %383 = vrcp.f32 %v270_v37  ;;  %v282_v41 = vand.u32 2147483648, %v270_v37  ;;  %v280_v43 = vand.u32 2147483647, %v270_v37  ;;  %vm276_vm4 = vweird.f32 %v270_v37 }
 0x12b   : > { %v283_v45 = vor.u32 1.1754944e-38, %v282_v41  ;;  %vm281_vm6 = vcmp.eq.f32.partialorder %v280_v43, 8.507059e+37 }
 0x12f   : > { %v384_v38 = vpop.eup %383 }
 0x130   : > { %v272_v39 = vmul.f32 %v384_v38, %v270_v37  ;;  %vm277_vm3 = vweird.f32 %v384_v38 }
 0x131   : > { %vm278_vm5 = vmor %vm276_vm4, %vm277_vm3 }
 0x132   : > { %v273_v40 = vsub.f32 1.0, %v272_v39 }
 0x134   : > { %v274_v42 = vmul.f32 %v384_v38, %v273_v40 }
 0x136   : > { %v275_v44 = vadd.f32 %v384_v38, %v274_v42 }
 0x138   : > { %v279_v46 = vsel %vm278_vm5, %v384_v38, %v275_v44 }
 0x139   : > { %v284_v47 = vsel %vm281_vm6, %v283_v45, %v279_v46 }
 0x13a   : > { %288 = vperm.xlu1 %377, %v284_v47  }
 0x1ac   : > { %v289_v51 = vpop.permute.xlu1 %288 }
 0x1ad   : > { %v293_v52 = vperm.slane %v289_v51, %v292_v50 }
 0x1af   : > { %v295_v53 = vmul.f32 %v293_v52, %v442_v0 }
 0x1b1   : > { %296 = vst [vmem:[%s224_s9] sm:$0xff] %v295_v53 }
 0x1b2 PF: > { %s15_s18 = sadd.s32 1, %s391_s18  }
 0x1b3   : > { %p12_p4 = scmp.ge.s32.totalorder %s15_s18, 4  }
 0x1b5   :  { %14 = sbr.rel (!%p12_p4) target bundleno = 1 (0x1), region = 70 }

</bundles_post_ra>
